<compile_context>
chip_gen: v7x
topology: tpu7x:2x2x1
jax: 0.10.0
libtpu: 0.0.40
codegen_flags: <defaults>
</compile_context>

<pallas_src>
import math
from functools import partial

import jax
import jax.numpy as jnp
from jax.experimental import pallas as pl
from jax.experimental.pallas import tpu as pltpu

VMEM_LIMIT = 48 * 1024 * 1024          # <= v7x 64 MiB physical VMEM
LANE = 128
NEG_BIG = -3.0e38                      # maxpool border pad (representable in bf16)


def _round_lane(c):
    return ((c + LANE - 1) // LANE) * LANE


def _pick_tm(m):
    for cand in (256, 128, 64, 32, 16, 8):
        if m % cand == 0:
            return cand
    return m                           # tiny M: single full block


# ----------------------------- Pallas kernels -----------------------------

def _matmul_affine_kernel(x_ref, w_ref, s_ref, b_ref, *rest, relu, has_res):
    """(tm,K)@(K,tn) on the MXU (bf16 in, f32 acc) + folded BN affine
    (+ optional fused residual add) (+ optional ReLU)."""
    if has_res:
        r_ref, o_ref = rest
    else:
        (o_ref,) = rest
    acc = jnp.dot(x_ref[...], w_ref[...], preferred_element_type=jnp.float32)
    y = acc * s_ref[...] + b_ref[...]
    if has_res:
        y = y + r_ref[...].astype(jnp.float32)
    if relu:
        y = jnp.maximum(y, 0.0)
    o_ref[...] = y.astype(o_ref.dtype)


def matmul_affine(x, w, scale, shift, relu, residual=None):
    """y = maybe_relu((x @ w) * scale + shift [+ residual]).

    x: (M, K) bf16; w: (K, Cout_p) bf16; scale/shift: (1, Cout_p) f32;
    residual: (M, Cout_p) bf16 or None.  Cout_p is lane-padded (multiple of 128).
    """
    M, K = x.shape
    cout_p = w.shape[1]
    tn = 256 if cout_p % 256 == 0 else 128
    tm = _pick_tm(M)
    grid = (M // tm, cout_p // tn)
    in_specs = [
        pl.BlockSpec((tm, K), lambda i, j: (i, 0)),
        pl.BlockSpec((K, tn), lambda i, j: (0, j)),
        pl.BlockSpec((1, tn), lambda i, j: (0, j)),
        pl.BlockSpec((1, tn), lambda i, j: (0, j)),
    ]
    args = [x, w, scale, shift]
    if residual is not None:
        in_specs.append(pl.BlockSpec((tm, tn), lambda i, j: (i, j)))
        args.append(residual)
    return pl.pallas_call(
        partial(_matmul_affine_kernel, relu=relu, has_res=residual is not None),
        out_shape=jax.ShapeDtypeStruct((M, cout_p), jnp.bfloat16),
        grid=grid,
        in_specs=in_specs,
        out_specs=pl.BlockSpec((tm, tn), lambda i, j: (i, j)),
        compiler_params=pltpu.CompilerParams(
            dimension_semantics=("parallel", "parallel"),
            vmem_limit_bytes=VMEM_LIMIT,
        ),
    )(*args)


def _conv3x3_bn_kernel(x_ref, w_ref, s_ref, b_ref, o_ref, *, stride, oh, ow, cin, relu):
    """Direct 3x3 conv: 9-tap accumulation over shifted slices of the phase-decomposed
    padded input.  x_ref: (n_phases, N, PH, PW, cin); w_ref: (9*cin, tn)."""
    n = o_ref.shape[0]
    tn = o_ref.shape[-1]
    acc = jnp.zeros((n * oh * ow, tn), jnp.float32)
    for t in range(9):
        di, dj = t // 3, t % 3
        if stride == 1:
            ph, r0, c0 = 0, di, dj
        else:  # stride 2
            ph = (di % 2) * 2 + (dj % 2)
            r0, c0 = di // 2, dj // 2
        xs = x_ref[ph, :, r0:r0 + oh, c0:c0 + ow, :].reshape(n * oh * ow, cin)
        acc = acc + jnp.dot(xs, w_ref[t * cin:(t + 1) * cin, :],
                            preferred_element_type=jnp.float32)
    y = acc * s_ref[...] + b_ref[...]
    if relu:
        y = jnp.maximum(y, 0.0)
    o_ref[...] = y.reshape(n, oh, ow, tn).astype(o_ref.dtype)


def _maxpool3x3s2_kernel(x_ref, o_ref, *, oh, ow):
    acc = None
    for t in range(9):
        di, dj = t // 3, t % 3
        ph = (di % 2) * 2 + (dj % 2)
        r0, c0 = di // 2, dj // 2
        v = x_ref[ph, :, r0:r0 + oh, c0:c0 + ow, :]
        acc = v if acc is None else jnp.maximum(acc, v)
    o_ref[...] = acc


def _avgpool_fc_kernel(x_ref, w_ref, b_ref, o_ref):
    feats = jnp.mean(x_ref[...].astype(jnp.float32), axis=1)       # global avg pool
    o_ref[...] = jnp.dot(feats.astype(jnp.bfloat16), w_ref[...],
                         preferred_element_type=jnp.float32) + b_ref[...]


# ----------------------------- JAX glue -----------------------------

def _stride_phases(x_pad, stride, oh, ow, pad_value):
    """(N,Hp,Wp,C) -> (n_phases, N, PH, PW, C) such that tap (di,dj) of a 3x3 window
    reads phase (di%stride)*stride+(dj%stride) at offset (di//stride, dj//stride)."""
    if stride == 1:
        return x_pad[None]
    ph_h, ph_w = oh + 1, ow + 1                  # max in-phase offset is 1 for stride 2
    n, hp, wp, c = x_pad.shape
    need_h, need_w = 2 * ph_h, 2 * ph_w
    if hp < need_h or wp < need_w:
        x_pad = jnp.pad(x_pad,
                        ((0, 0), (0, max(0, need_h - hp)), (0, max(0, need_w - wp)), (0, 0)),
                        constant_values=pad_value)
    phases = [x_pad[:, r::2, s::2, :][:, :ph_h, :ph_w, :]
              for r in range(2) for s in range(2)]
    return jnp.stack(phases, axis=0)


def conv1x1_bn(x, p, stride, relu, residual=None):
    n, h, w_, c = x.shape
    xs = x[:, ::stride, ::stride, :] if stride > 1 else x
    oh, ow = xs.shape[1], xs.shape[2]
    mat = xs.reshape(n * oh * ow, c)
    res = None
    if residual is not None:
        res = residual.reshape(n * oh * ow, residual.shape[-1])
    y = matmul_affine(mat, p['w'], p['scale'], p['shift'], relu=relu, residual=res)
    return y.reshape(n, oh, ow, p['w'].shape[1])


def conv3x3_bn(x, p, stride, relu):
    n, h, w_, c = x.shape
    cout_p = p['w'].shape[1]
    oh = (h + 2 - 3) // stride + 1
    ow = (w_ + 2 - 3) // stride + 1
    x_pad = jnp.pad(x, ((0, 0), (1, 1), (1, 1), (0, 0)))
    phases = _stride_phases(x_pad, stride, oh, ow, 0.0)
    n_ph, _, ph_h, ph_w, _ = phases.shape
    tn = 256 if cout_p % 256 == 0 else 128
    return pl.pallas_call(
        partial(_conv3x3_bn_kernel, stride=stride, oh=oh, ow=ow, cin=c, relu=relu),
        out_shape=jax.ShapeDtypeStruct((n, oh, ow, cout_p), jnp.bfloat16),
        grid=(cout_p // tn,),
        in_specs=[
            pl.BlockSpec((n_ph, n, ph_h, ph_w, c), lambda j: (0, 0, 0, 0, 0)),
            pl.BlockSpec((9 * c, tn), lambda j: (0, j)),
            pl.BlockSpec((1, tn), lambda j: (0, j)),
            pl.BlockSpec((1, tn), lambda j: (0, j)),
        ],
        out_specs=pl.BlockSpec((n, oh, ow, tn), lambda j: (0, 0, 0, j)),
        compiler_params=pltpu.CompilerParams(
            dimension_semantics=("parallel",),
            vmem_limit_bytes=VMEM_LIMIT,
        ),
    )(phases, p['w'], p['scale'], p['shift'])


def maxpool_3x3_s2(x):
    n, h, w_, c = x.shape
    x_pad = jnp.pad(x, ((0, 0), (1, 1), (1, 1), (0, 0)), constant_values=NEG_BIG)
    oh = (h + 2 - 3) // 2 + 1
    ow = (w_ + 2 - 3) // 2 + 1
    phases = _stride_phases(x_pad, 2, oh, ow, NEG_BIG)
    return pl.pallas_call(
        partial(_maxpool3x3s2_kernel, oh=oh, ow=ow),
        out_shape=jax.ShapeDtypeStruct((n, oh, ow, c), x.dtype),
        compiler_params=pltpu.CompilerParams(vmem_limit_bytes=VMEM_LIMIT),
    )(phases)


def avgpool_fc(x_nhwc, w, b):
    n, h, wdt, c = x_nhwc.shape
    x3 = x_nhwc.reshape(n, h * wdt, c)
    return pl.pallas_call(
        _avgpool_fc_kernel,
        out_shape=jax.ShapeDtypeStruct((n, w.shape[1]), jnp.float32),
        compiler_params=pltpu.CompilerParams(vmem_limit_bytes=VMEM_LIMIT),
    )(x3, w, b)


def extract_patches(x, kh, kw, stride, pad):
    """Stem-only im2col: (N,H,W,C) -> (N,OH,OW,kh*kw,C)."""
    if pad > 0:
        x = jnp.pad(x, ((0, 0), (pad, pad), (pad, pad), (0, 0)))
    _, hp, wp, _ = x.shape
    oh = (hp - kh) // stride + 1
    ow = (wp - kw) // stride + 1
    cols = []
    for i in range(kh):
        for j in range(kw):
            cols.append(x[:, i:i + (oh - 1) * stride + 1:stride,
                          j:j + (ow - 1) * stride + 1:stride, :])
    return jnp.stack(cols, axis=3), oh, ow


def conv_stem_7x7(x, p):
    # TODO(synk): the 7x7 stem keeps a small plain-JAX im2col (K = 147, tiny tensor);
    # all 3x3 convs use the in-kernel tap accumulation instead.
    n = x.shape[0]
    patches, oh, ow = extract_patches(x, 7, 7, 2, 3)
    mat = patches.reshape(n * oh * ow, 7 * 7 * x.shape[3])
    y = matmul_affine(mat, p['w'], p['scale'], p['shift'], relu=True)
    return y.reshape(n, oh, ow, p['w'].shape[1])


# ----------------------------- parameters (deterministic, synthetic) -----------------------------

def conv_params(key, cout, cin, kh, kw, cin_pad=None):
    """Weights reshaped for the Pallas matmul / direct-conv kernels; BatchNorm folded
    (inference).  Both channel axes are zero-padded to lane-dense counts."""
    cin_p = _round_lane(cin) if cin_pad is None else cin_pad
    cout_p = _round_lane(cout)
    k1, k2, k3, k4, k5 = jax.random.split(key, 5)
    fan_in = cin * kh * kw
    w = jax.random.normal(k1, (cout, cin, kh, kw), jnp.float32) / math.sqrt(fan_in)
    gamma = 1.0 + 0.1 * jax.random.normal(k2, (cout,), jnp.float32)
    beta = 0.1 * jax.random.normal(k3, (cout,), jnp.float32)
    mean = 0.1 * jax.random.normal(k4, (cout,), jnp.float32)
    var = 1.0 + 0.1 * jnp.abs(jax.random.normal(k5, (cout,), jnp.float32))
    scale = gamma / jnp.sqrt(var + 1e-5)               # folded inference BatchNorm
    shift = beta - mean * scale
    w_full = jnp.zeros((cout_p, cin_p, kh, kw), jnp.float32).at[:cout, :cin].set(w)
    w_mat = jnp.transpose(w_full, (2, 3, 1, 0)).reshape(kh * kw * cin_p, cout_p)
    scale_p = jnp.zeros((1, cout_p), jnp.float32).at[0, :cout].set(scale)
    shift_p = jnp.zeros((1, cout_p), jnp.float32).at[0, :cout].set(shift)
    return dict(w=w_mat.astype(jnp.bfloat16), scale=scale_p, shift=shift_p)


def make_layer_params(key, cin, planes, blocks, stride, expansion=4):
    keys = jax.random.split(key, blocks)
    layer = []
    for b in range(blocks):
        ks = jax.random.split(keys[b], 4)
        s = stride if b == 0 else 1
        in_c = cin if b == 0 else planes * expansion
        blk = {
            'conv1': conv_params(ks[0], planes, in_c, 1, 1),
            'conv2': conv_params(ks[1], planes, planes, 3, 3),
            'conv3': conv_params(ks[2], planes * expansion, planes, 1, 1),
            'stride': s,
        }
        if s != 1 or in_c != planes * expansion:
            blk['downsample'] = conv_params(ks[3], planes * expansion, in_c, 1, 1)
        layer.append(blk)
    return layer


def make_resnet50_params(key, num_outputs):
    ks = jax.random.split(key, 7)
    nop = _round_lane(num_outputs)
    fc_w = jax.random.normal(ks[5], (2048, num_outputs), jnp.float32) / math.sqrt(2048)
    fc_b = 0.01 * jax.random.normal(ks[6], (1, num_outputs), jnp.float32)
    return {
        'stem': conv_params(ks[0], 64, 3, 7, 7, cin_pad=3),
        'layer1': make_layer_params(ks[1], 64, 64, 3, 1),
        'layer2': make_layer_params(ks[2], 256, 128, 4, 2),
        'layer3': make_layer_params(ks[3], 512, 256, 6, 2),
        'layer4': make_layer_params(ks[4], 1024, 512, 3, 2),
        'fc_w': jnp.zeros((2048, nop), jnp.float32).at[:, :num_outputs]
                   .set(fc_w).astype(jnp.bfloat16),
        'fc_b': jnp.zeros((1, nop), jnp.float32).at[:, :num_outputs].set(fc_b),
    }


# ----------------------------- forward -----------------------------

def bottleneck(x, blk):
    if 'downsample' in blk:
        identity = conv1x1_bn(x, blk['downsample'], stride=blk['stride'], relu=False)
    else:
        identity = x
    out = conv1x1_bn(x, blk['conv1'], stride=1, relu=True)
    out = conv3x3_bn(out, blk['conv2'], stride=blk['stride'], relu=True)
    # residual add + final ReLU fused into the conv3 matmul epilogue
    return conv1x1_bn(out, blk['conv3'], stride=1, relu=True, residual=identity)


def resnet50_forward(x_nchw, params):
    x = jnp.transpose(x_nchw, (0, 2, 3, 1)).astype(jnp.bfloat16)   # NCHW -> NHWC, bf16
    x = conv_stem_7x7(x, params['stem'])
    x = maxpool_3x3_s2(x)
    for name in ('layer1', 'layer2', 'layer3'):
        for blk in params[name]:
            x = bottleneck(x, blk)
    # TODO(synk): nn.Dropout(0.5) precedes layer4; identity in eval mode (training-mode RNG dropout not implemented).
    for blk in params['layer4']:
        x = bottleneck(x, blk)
    return avgpool_fc(x, params['fc_w'], params['fc_b'])           # (N, lane-padded outputs)


# ----------------------------- main -----------------------------

if __name__ == "__main__":
    key = jax.random.PRNGKey(0)
    k_param, k_x = jax.random.split(key)

    num_outputs = 10
    params = make_resnet50_params(k_param, num_outputs)

    # batch=2, RGB, 32x32 (small but large enough to survive all five stride-2 stages)
    x = jax.random.normal(k_x, (2, 3, 32, 32), jnp.float32)

    logits_padded = resnet50_forward(x, params)
    out = jax.block_until_ready(logits_padded)[:, :num_outputs]
    assert out.shape == (2, num_outputs)
    assert bool(jnp.all(jnp.isfinite(out)))
    print("KERNEL_OK")
</pallas_src>

<mosaic_0001>
module attributes {stable_mosaic.version = 11 : i64} {
  func.func @_matmul_affine_kernel(%arg0: i32, %arg1: i32, %arg2: memref<256x147xbf16, #tpu.memory_space<vmem>>, %arg3: memref<147x128xbf16, #tpu.memory_space<vmem>>, %arg4: memref<1x128xf32, #tpu.memory_space<vmem>>, %arg5: memref<1x128xf32, #tpu.memory_space<vmem>>, %arg6: memref<256x128xbf16, #tpu.memory_space<vmem>>) attributes {dimension_semantics = [#tpu.dimension_semantics<parallel>, #tpu.dimension_semantics<parallel>], iteration_bounds = array<i64: 2, 1>, scalar_prefetch = 0 : i64, scratch_operands = 0 : i64, tpu.core_type = #tpu.core_type<tc>, window_params = [{transform_indices = @transform_0, window_bounds = array<i64: 256, 147>}, {transform_indices = @transform_1, window_bounds = array<i64: 147, 128>}, {transform_indices = @transform_2, window_bounds = array<i64: 1, 128>}, {transform_indices = @transform_3, window_bounds = array<i64: 1, 128>}, {transform_indices = @transform_4, window_bounds = array<i64: 256, 128>}]} {
    %c0 = arith.constant 0 : index
    %c0_0 = arith.constant 0 : index
    %0 = vector.load %arg2[%c0, %c0_0] : memref<256x147xbf16, #tpu.memory_space<vmem>>, vector<256x147xbf16>
    %c0_1 = arith.constant 0 : index
    %c0_2 = arith.constant 0 : index
    %1 = vector.load %arg3[%c0_1, %c0_2] : memref<147x128xbf16, #tpu.memory_space<vmem>>, vector<147x128xbf16>
    %cst = arith.constant dense<0.000000e+00> : vector<256x128xf32>
    %2 = tpu.matmul %0, %1, %cst {dimension_numbers = #tpu.dot_dimension_numbers<[1], [0], [0], [1], [0, 0, 1, 1], [], []>} : vector<256x147xbf16>, vector<147x128xbf16>, vector<256x128xf32> -> vector<256x128xf32>
    %c0_3 = arith.constant 0 : index
    %c0_4 = arith.constant 0 : index
    %3 = vector.load %arg4[%c0_3, %c0_4] : memref<1x128xf32, #tpu.memory_space<vmem>>, vector<1x128xf32>
    %4 = vector.broadcast %3 : vector<1x128xf32> to vector<256x128xf32>
    %5 = arith.mulf %2, %4 : vector<256x128xf32>
    %c0_5 = arith.constant 0 : index
    %c0_6 = arith.constant 0 : index
    %6 = vector.load %arg5[%c0_5, %c0_6] : memref<1x128xf32, #tpu.memory_space<vmem>>, vector<1x128xf32>
    %7 = vector.broadcast %6 : vector<1x128xf32> to vector<256x128xf32>
    %8 = arith.addf %5, %7 : vector<256x128xf32>
    %cst_7 = arith.constant 0.000000e+00 : f32
    %9 = vector.broadcast %cst_7 : f32 to vector<256x128xf32>
    %10 = arith.maximumf %8, %9 : vector<256x128xf32>
    %11 = arith.truncf %10 : vector<256x128xf32> to vector<256x128xbf16>
    %c0_8 = arith.constant 0 : index
    %c0_9 = arith.constant 0 : index
    %12 = vector.load %arg6[%c0_8, %c0_9] : memref<256x128xbf16, #tpu.memory_space<vmem>>, vector<256x128xbf16>
    tpu.vector_store %arg6[%c0_8, %c0_9], %11 {strides = array<i32>} : memref<256x128xbf16, #tpu.memory_space<vmem>>, vector<256x128xbf16>,
    return
  }
  func.func @transform_0(%arg0: i32, %arg1: i32) -> (i32, i32) {
    %c0_i32 = arith.constant 0 : i32
    %c0_i32_0 = arith.constant 0 : i32
    return %arg0, %c0_i32 : i32, i32
  }
  func.func @transform_1(%arg0: i32, %arg1: i32) -> (i32, i32) {
    %c0_i32 = arith.constant 0 : i32
    %c0_i32_0 = arith.constant 0 : i32
    return %c0_i32, %arg1 : i32, i32
  }
  func.func @transform_2(%arg0: i32, %arg1: i32) -> (i32, i32) {
    %c0_i32 = arith.constant 0 : i32
    %c0_i32_0 = arith.constant 0 : i32
    return %c0_i32, %arg1 : i32, i32
  }
  func.func @transform_3(%arg0: i32, %arg1: i32) -> (i32, i32) {
    %c0_i32 = arith.constant 0 : i32
    %c0_i32_0 = arith.constant 0 : i32
    return %c0_i32, %arg1 : i32, i32
  }
  func.func @transform_4(%arg0: i32, %arg1: i32) -> (i32, i32) {
    %c0_i32 = arith.constant 0 : i32
    return %arg0, %arg1 : i32, i32
  }
}

</mosaic_0001>

<bundles_post_ra>
// kernel: tpu_custom_call.1
= control target key start
LH: loop header
LB: loop body
LE: loop exit
PB: predicated region body
PF: predicated region fallthrough
CT: control target
= control target key end

     0   :  { %9 = vsyncpa [#allocation3], 0  ;;  %s1903_s0 = inlined_call_operand.vmem [shape: bf16[512,147], index: 0, kind: input, shape index: {}]   ;;  %s1904_s1 = inlined_call_operand.vmem [shape: bf16[147,128], index: 1, kind: input, shape index: {}]   ;;  %s1905_s2 = inlined_call_operand.vmem [shape: f32[1,128], index: 2, kind: input, shape index: {}]   ;;  %s1906_s3 = inlined_call_operand.vmem [shape: f32[1,128], index: 3, kind: input, shape index: {}]   ;;  %s1907_s4 = inlined_call_operand.hbm [shape: bf16[512,128], index: 4, kind: output, shape index: {}]  }
   0x1   :  { %11 = vsyncpa [#allocation3 + $0x1], 0  ;;  %s1612_s15 = smov 0   ;;  %s1614_s16 = smov 0  }
   0x2   :  { %s1616_s17 = smov 0   ;;  %s1618_s18 = smov 0  }
   0x3   :  { %s1620_s19 = smov 0   ;;  %s1622_s20 = smov 0  }
   0x4 LB: > { %s1127_s21 = sadd.s32 4294967295, %s1580_s20   ;;  %s1128_s22 = sadd.s32 4294967294, %s1580_s20   ;;  %s1580_s20 = sphi %s1622_s20, %s17_s20   ;;  %s1576_s19 = sphi %s1620_s19, %s1914_s19   ;;  %s1572_s18 = sphi %s1618_s18, %s1913_s18   ;;  %s1568_s17 = sphi %s1616_s17, %s1912_s17   ;;  %s1564_s16 = sphi %s1614_s16, %s1911_s16   ;;  %s1560_s15 = sphi %s1612_s15, %s1910_s15  }
   0x5   : > { %s29_s23 = sadd.s32 1, %s1576_s19  ;;  %s142_s24 = sadd.s32 1, %s1568_s17 }
   0x6   : > { %p31_p0 = scmp.ge.s32.totalorder %s29_s23, 2  ;;  %p152_p1 = scmp.ne.s32.totalorder %s1568_s17, %s1564_s16 }
   0x7   : > { %p153_p2 = scmp.eq.s32.totalorder %s1127_s21, 1  ;;  %p158_p3 = scmp.ne.s32.totalorder %s1564_s16, %s1560_s15 }
   0x8   : > { %s1916_s23 = smov (%p31_p0, %s29_s23), 0  ;;  %p159_p5 = scmp.eq.s32.totalorder %s1128_s22, 1 }
   0x9   : > { %p1652_p4 = por %p153_p2, %p152_p1  ;;  %s137_s26 = ssub.s32 %s1576_s19, %s1916_s23 }
   0xa   : > { %p1134_p6 = scmp.ge.s32.totalorder %s1580_s20, 1  ;;  %p140_p7 = scmp.eq.s32.totalorder %s137_s26, 0 }
   0xb   : > { %p1659_p8 = por %p159_p5, %p158_p3  ;;  %p206_p9 = scmp.lt.s32.totalorder %s1580_s20, 3 }
   0xc   : > { %s1665_s28 = scalar_select %p140_p7, %s1568_s17, %s142_s24  }
   0xd   : > { %p207_p10 = pnand %p1134_p6, %p206_p9 }
   0xe   : > { %v1444_v0 = vld [vmem:[%s1904_s1] sm:$0xff] (!%p207_p10)   ;;  %v1582_v1 = vmov (!%p207_p10), 0   ;;  %v1445_v2 = vld [vmem:[%s1904_s1 + $0x8] sm:$0xff] (!%p207_p10)   ;;  %v1446_v3 = vld [vmem:[%s1904_s1 + $0x10] sm:$0xff] (!%p207_p10)   ;;  %s1136_s9 = sshll.u32 (!%p207_p10), %s1572_s18, 5  ;;  %vm514_vm0 = vcmask (!%p207_p10), 154624  }
   0xf   : > { %210 = sbr.rel (%p207_p10) target bundleno = 349 (0x15d), region = 36  ;;  %570 = vmatprep.subr.bf16.mxu0 (!%p207_p10), %v1582_v1  ;;  %1365 = vmatprep.subr.bf16.mxu1 (!%p207_p10), %v1582_v1  ;;  %p244_p11 = scmp.lt.s32.totalorder (!%p207_p10), %s1136_s9, 63  ;;  %v1447_v4 = vld [vmem:[%s1904_s1 + $0x18] sm:$0xff] (!%p207_p10)   ;;  %v1448_v5 = vld [vmem:[%s1904_s1 + $0x20] sm:$0xff] (!%p207_p10)   ;;  %v1449_v8 = vld [vmem:[%s1904_s1 + $0x28] sm:$0xff] (!%p207_p10)   ;;  %vm563_vm1 = vcmask (!%p207_p10), 1040384  }
  0x10   : > { %571 = vmatpush1.bf16.msra.mxu0 (!%p207_p10), %v1444_v0  ;;  %1375 = vmatpush1.bf16.msra.mxu1 (!%p207_p10), %v1444_v0  ;;  %v1450_v9 = vld [vmem:[%s1904_s1 + $0x30] sm:$0xff] (!%p207_p10)   ;;  %v1451_v10 = vld [vmem:[%s1904_s1 + $0x38] sm:$0xff] (!%p207_p10)   ;;  %vm564_vm2 = vcmask (!%p207_p10), 1041408   ;;  %v1583_v11 = vmov (!%p207_p10), 65535   ;;  %v1452_v13 = vld [vmem:[%s1904_s1 + $0x40] sm:$0xff] (!%p207_p10)   ;;  %s1269_s29 = sshll.u32 (!%p207_p10), %s1572_s18, 11 }
  0x11   : > { %572 = vmatprep.subr.bf16.mxu0 (!%p207_p10), %v1582_v1  ;;  %1366 = vmatprep.subr.bf16.mxu1 (!%p207_p10), %v1582_v1  ;;  %v565_v12 = vsel (!%p207_p10), %vm563_vm1, 4294967295, %v1583_v11  ;;  %v1453_v14 = vld [vmem:[%s1904_s1 + $0x48] ss:$0 sps:$4 sm:$0x33] (!%p207_p10)   ;;  %v1754_v47 = vld [vmem:[%s1905_s2] ss:$0 sm:$0xff] (!%p207_p10)  ;;  %s1849_s7 = scalar_lea.hbm (!%p207_p10), %s1907_s4, %s1269_s29 }
  0x12   : > { %v566_v15 = vsel (!%p207_p10), %vm564_vm2, %v565_v12, 0  ;;  %v1759_v49 = vld [vmem:[%s1906_s3] ss:$0 sm:$0xff] (!%p207_p10) }
  0x13   : > { %v568_v16 = vand.u32 (!%p207_p10), %v1453_v14, %v566_v15 }
  0x14   : > { %573 = vmatpush1.bf16.msra.mxu0 (!%p207_p10), %v1445_v2  ;;  %1376 = vmatpush1.bf16.msra.mxu1 (!%p207_p10), %v1445_v2 }
  0x15   : > { %574 = vmatprep.subr.bf16.mxu0 (!%p207_p10), %v1582_v1  ;;  %1367 = vmatprep.subr.bf16.mxu1 (!%p207_p10), %v1582_v1 }
  0x16   : > { %s1918_s9 = smov (!%p244_p11, %s1136_s9), 63 }
  0x17   : > { %s1236_s12 = sshll.u32 %s1918_s9, 3  ;;  %s1584_s9 = smov [#allocation2]  }
  0x18   : > { %575 = vmatpush1.bf16.msra.mxu0 %v1446_v3  ;;  %1377 = vmatpush1.bf16.msra.mxu1 %v1446_v3  ;;  %s1683_s21 = scalar_lea.vmem %s1903_s0, %s1236_s12  ;;  %s1506_s10 = sshll.u32 %s1584_s9, 4  ;;  %s1507_s10 = int_to_ptr.vmem [resolvable:$false] %s1506_s10 }
  0x19   : > { %576 = vmatprep.subr.bf16.mxu0 %v1582_v1  ;;  %1368 = vmatprep.subr.bf16.mxu1 %v1582_v1  ;;  %v1456_v6 = vld [vmem:[%s1683_s21 + $0x4] ss:$8 sps:$4 sm:$0xff]   ;;  %v1454_v17 = vld [vmem:[%s1683_s21] ss:$8 sps:$4 sm:$0xff]   ;;  %v1460_v19 = vld [vmem:[%s1683_s21 + $0x14] ss:$8 sps:$4 sm:$0xff]  }
  0x1a   : > { %v1459_v7 = vld [vmem:[%s1683_s21 + $0x84] ss:$8 sps:$4 sm:$0xff]   ;;  %1181 = vmatprep.mubr.msk.bf16.mxu0 %vm514_vm0, %v1456_v6  ;;  %v1457_v18 = vld [vmem:[%s1683_s21 + $0x80] ss:$8 sps:$4 sm:$0xff]   ;;  %v1462_v20 = vld [vmem:[%s1683_s21 + $0x94] ss:$8 sps:$4 sm:$0xff]  }
  0x1b   : > { %1189 = vmatprep.mubr.msk.bf16.mxu1 %vm514_vm0, %v1459_v7  ;;  %v1464_v21 = vld [vmem:[%s1683_s21 + $0x10] ss:$8 sps:$4 sm:$0xff]   ;;  %v1466_v23 = vld [vmem:[%s1683_s21 + $0x24] ss:$8 sps:$4 sm:$0xff]   ;;  %v1470_v25 = vld [vmem:[%s1683_s21 + $0x20] ss:$8 sps:$4 sm:$0xff]  }
  0x1c   : > { %577 = vmatpush1.bf16.msra.mxu0 %v1447_v4  ;;  %1378 = vmatpush1.bf16.msra.mxu1 %v1447_v4  ;;  %v1465_v22 = vld [vmem:[%s1683_s21 + $0x90] ss:$8 sps:$4 sm:$0xff]   ;;  %v1468_v24 = vld [vmem:[%s1683_s21 + $0xa4] ss:$8 sps:$4 sm:$0xff]   ;;  %v1471_v26 = vld [vmem:[%s1683_s21 + $0xa0] ss:$8 sps:$4 sm:$0xff]  }
  0x1d   : > { %578 = vmatprep.subr.bf16.mxu0 %v1582_v1  ;;  %1369 = vmatprep.subr.bf16.mxu1 %v1582_v1  ;;  %v1472_v27 = vld [vmem:[%s1683_s21 + $0x34] ss:$8 sps:$4 sm:$0xff]   ;;  %v1476_v29 = vld [vmem:[%s1683_s21 + $0x30] ss:$8 sps:$4 sm:$0xff]   ;;  %v1478_v31 = vld [vmem:[%s1683_s21 + $0x44] ss:$8 sps:$4 sm:$0xff]  }
  0x1e   : > { %v1474_v28 = vld [vmem:[%s1683_s21 + $0xb4] ss:$8 sps:$4 sm:$0xff]   ;;  %v1477_v30 = vld [vmem:[%s1683_s21 + $0xb0] ss:$8 sps:$4 sm:$0xff]   ;;  %v1480_v32 = vld [vmem:[%s1683_s21 + $0xc4] ss:$8 sps:$4 sm:$0xff]  }
  0x1f   : > { %v1482_v33 = vld [vmem:[%s1683_s21 + $0x40] ss:$8 sps:$4 sm:$0xff]   ;;  %v1484_v35 = vld [vmem:[%s1683_s21 + $0x54] ss:$8 sps:$4 sm:$0xff]   ;;  %v1488_v37 = vld [vmem:[%s1683_s21 + $0x50] ss:$8 sps:$4 sm:$0xff]  }
  0x20   : > { %579 = vmatpush1.bf16.msra.mxu0 %v1448_v5  ;;  %1379 = vmatpush1.bf16.msra.mxu1 %v1448_v5  ;;  %v1483_v34 = vld [vmem:[%s1683_s21 + $0xc0] ss:$8 sps:$4 sm:$0xff]   ;;  %v1486_v36 = vld [vmem:[%s1683_s21 + $0xd4] ss:$8 sps:$4 sm:$0xff]   ;;  %v1489_v38 = vld [vmem:[%s1683_s21 + $0xd0] ss:$8 sps:$4 sm:$0xff]  }
  0x21   : > { %580 = vmatprep.subr.bf16.mxu0 %v1582_v1  ;;  %1370 = vmatprep.subr.bf16.mxu1 %v1582_v1  ;;  %v1490_v39 = vld [vmem:[%s1683_s21 + $0x64] ss:$8 sps:$4 sm:$0xff]   ;;  %v1494_v41 = vld [vmem:[%s1683_s21 + $0x60] ss:$8 sps:$4 sm:$0xff]   ;;  %v1496_v43 = vld [vmem:[%s1683_s21 + $0x74] ss:$8 sps:$4 sm:$0xff]  }
  0x22   : > { %v1492_v40 = vld [vmem:[%s1683_s21 + $0xe4] ss:$8 sps:$4 sm:$0xff]   ;;  %v1495_v42 = vld [vmem:[%s1683_s21 + $0xe0] ss:$8 sps:$4 sm:$0xff]   ;;  %v1498_v44 = vld [vmem:[%s1683_s21 + $0xf4] ss:$8 sps:$4 sm:$0xff]  }
  0x23   : > { %v1500_v45 = vld [vmem:[%s1683_s21 + $0x70] ss:$8 sps:$4 sm:$0xff]   ;;  %s1508_s11 = scalar_lea.vmem %s1507_s10, 4096 }
  0x24   : > { %581 = vmatpush1.bf16.msra.mxu0 %v1449_v8  ;;  %1380 = vmatpush1.bf16.msra.mxu1 %v1449_v8  ;;  %v1501_v46 = vld [vmem:[%s1683_s21 + $0xf0] ss:$8 sps:$4 sm:$0xff]   ;;  %s240_s21 = sand.u32 1, %s1564_s16  }
  0x25   : > { %582 = vmatprep.subr.bf16.mxu0 %v1582_v1  ;;  %1371 = vmatprep.subr.bf16.mxu1 %v1582_v1  ;;  %s1135_s24 = sshll.u32 %s240_s21, 7  ;;  %s1857_s18 = scalar_lea.sflag [#allocation3], %s240_s21 }
  0x26   : > { %s1774_s26 = scalar_lea.vmem [#allocation2], %s1135_s24 }
  0x27   : > { %s1016_s30 = sshll.u32 %s1774_s26, 4  ;;  %s1851_s30 = int_to_ptr.vmem [resolvable:$true] %s1016_s30 }
  0x28   : > { %583 = vmatpush1.bf16.msra.mxu0 %v1450_v9  ;;  %1381 = vmatpush1.bf16.msra.mxu1 %v1450_v9  ;;  %s1502_s8 = scalar_lea.vmem %s1851_s30, 2048  ;;  %p1509_p1 = scmp.lt.s32.totalorder %s1851_s30, %s1507_s10 }
  0x29   : > { %584 = vmatprep.subr.bf16.mxu0 %v1582_v1  ;;  %1372 = vmatprep.subr.bf16.mxu1 %v1582_v1  ;;  %p1503_p12 = scmp.ne.s32.totalorder %s1851_s30, %s1502_s8  ;;  %p1510_p2 = scmp.lt.s32.totalorder %s1508_s11, %s1502_s8 }
  0x2b   : > { %p1504_p13 = pnand %p1503_p12, %p1652_p4  ;;  %p1511_p3 = por %p1510_p2, %p1509_p1 }
  0x2c   : > { %585 = vmatpush1.bf16.msra.mxu0 %v1451_v10  ;;  %1382 = vmatpush1.bf16.msra.mxu1 %v1451_v10 }
  0x2d   : > { %586 = vmatprep.subr.bf16.mxu0 %v1582_v1  ;;  %1373 = vmatprep.subr.bf16.mxu1 %v1582_v1  ;;  %p1505_p0 = pneg %p1504_p13 }
  0x2f   : > { %p1512_p5 = pnand %p1511_p3, %p1505_p0 }
  0x30   : > { %587 = vmatpush1.bf16.msra.mxu0 %v1452_v13  ;;  %1383 = vmatpush1.bf16.msra.mxu1 %v1452_v13 }
  0x31   : > { %588 = vmatprep.subr.bf16.mxu0 %v1582_v1  ;;  %1374 = vmatprep.subr.bf16.mxu1 %v1582_v1 }
  0x34   : > { %589 = vmatpush1.bf16.msra.mxu0 %v568_v16  ;;  %1384 = vmatpush1.bf16.msra.mxu1 %v568_v16 }
  0x37   : > { %603 = vmatmul.mubr.bf16.vlgmr.msra.gmra.mrb[0].mxu0 %v1454_v17  ;;  %667 = vmatmul.mubr.bf16.vlgmr.msra.gmra.mrb[0].mxu1 %v1457_v18 }
  0x38   : > { %1182 = vmatprep.mubr.msk.bf16.mxu0 %vm514_vm0, %v1460_v19  ;;  %1190 = vmatprep.mubr.msk.bf16.mxu1 %vm514_vm0, %v1462_v20 }
  0x3f   : > { %611 = vmatmul.mubr.bf16.gmra.mrb[4].mxu0 %v1464_v21  ;;  %675 = vmatmul.mubr.bf16.gmra.mrb[4].mxu1 %v1465_v22 }
  0x40   : > { %1183 = vmatprep.mubr.msk.bf16.mxu0 %vm514_vm0, %v1466_v23  ;;  %1191 = vmatprep.mubr.msk.bf16.mxu1 %vm514_vm0, %v1468_v24 }
  0x47   : > { %619 = vmatmul.mubr.bf16.gmra.mrb[8].mxu0 %v1470_v25  ;;  %683 = vmatmul.mubr.bf16.gmra.mrb[8].mxu1 %v1471_v26 }
  0x48   : > { %1184 = vmatprep.mubr.msk.bf16.mxu0 %vm514_vm0, %v1472_v27  ;;  %1192 = vmatprep.mubr.msk.bf16.mxu1 %vm514_vm0, %v1474_v28 }
  0x4f   : > { %627 = vmatmul.mubr.bf16.gmra.mrb[12].mxu0 %v1476_v29  ;;  %691 = vmatmul.mubr.bf16.gmra.mrb[12].mxu1 %v1477_v30 }
  0x50   : > { %1185 = vmatprep.mubr.msk.bf16.mxu0 %vm514_vm0, %v1478_v31  ;;  %1193 = vmatprep.mubr.msk.bf16.mxu1 %vm514_vm0, %v1480_v32 }
  0x57   : > { %635 = vmatmul.mubr.bf16.gmra.mrb[16].mxu0 %v1482_v33  ;;  %699 = vmatmul.mubr.bf16.gmra.mrb[16].mxu1 %v1483_v34 }
  0x58   : > { %1186 = vmatprep.mubr.msk.bf16.mxu0 %vm514_vm0, %v1484_v35  ;;  %1194 = vmatprep.mubr.msk.bf16.mxu1 %vm514_vm0, %v1486_v36 }
  0x5f   : > { %643 = vmatmul.mubr.bf16.gmra.mrb[20].mxu0 %v1488_v37  ;;  %707 = vmatmul.mubr.bf16.gmra.mrb[20].mxu1 %v1489_v38 }
  0x60   : > { %1187 = vmatprep.mubr.msk.bf16.mxu0 %vm514_vm0, %v1490_v39  ;;  %1195 = vmatprep.mubr.msk.bf16.mxu1 %vm514_vm0, %v1492_v40 }
  0x67   : > { %651 = vmatmul.mubr.bf16.gmra.mrb[24].mxu0 %v1494_v41  ;;  %715 = vmatmul.mubr.bf16.gmra.mrb[24].mxu1 %v1495_v42 }
  0x68   : > { %1188 = vmatprep.mubr.msk.bf16.mxu0 %vm514_vm0, %v1496_v43  ;;  %1196 = vmatprep.mubr.msk.bf16.mxu1 %vm514_vm0, %v1498_v44 }
  0x6f   : > { %659 = vmatmul.mubr.bf16.gmra.mrb[28].mxu0 %v1500_v45  ;;  %723 = vmatmul.mubr.bf16.gmra.mrb[28].mxu1 %v1501_v46 }
 0x10a   : > { %v604_v48 = vpop.f32.mrb[0].mxu0  ;;  %v668_v50 = vpop.f32.mrb[0].mxu1 }
 0x10b   : > { %v738_v51 = vmul.f32 %v1754_v47, %v604_v48  ;;  %v754_v52 = vmul.f32 %v1754_v47, %v668_v50  ;;  %v606_v53 = vpop.f32.mrb[1].mxu0  ;;  %v670_v54 = vpop.f32.mrb[1].mxu1 }
 0x10c   : > { %v607_v55 = vpop.f32.mrb[2].mxu0  ;;  %v671_v56 = vpop.f32.mrb[2].mxu1 }
 0x10d   : > { %v777_v57 = vadd.f32 %v1759_v49, %v738_v51  ;;  %v793_v58 = vadd.f32 %v1759_v49, %v754_v52  ;;  %v739_v59 = vmul.f32 %v1754_v47, %v607_v55  ;;  %v755_v60 = vmul.f32 %v1754_v47, %v671_v56  ;;  %v609_v61 = vpop.f32.mrb[3].mxu0  ;;  %v673_v62 = vpop.f32.mrb[3].mxu1 }
 0x10f   : > { %v778_v63 = vadd.f32 %v1759_v49, %v739_v59  ;;  %v794_v0 = vadd.f32 %v1759_v49, %v755_v60  ;;  %v809_v1 = vmax.f32 %v777_v57, 0.0  ;;  %v825_v2 = vmax.f32 %v793_v58, 0.0 }
 0x111   : > { %v810_v3 = vmax.f32 %v778_v63, 0.0  ;;  %v826_v4 = vmax.f32 %v794_v0, 0.0 }
 0x112   : > { %v612_v5 = vpop.f32.mrb[4].mxu0  ;;  %v676_v6 = vpop.f32.mrb[4].mxu1 }
 0x113   : > { %v1273_v7 = vpack.c.bf16 %v810_v3, %v809_v1  ;;  %v1313_v8 = vpack.c.bf16 %v826_v4, %v825_v2  ;;  %v740_v9 = vmul.f32 %v1754_v47, %v612_v5  ;;  %v756_v10 = vmul.f32 %v1754_v47, %v676_v6  ;;  %v614_v11 = vpop.f32.mrb[5].mxu0  ;;  %v678_v12 = vpop.f32.mrb[5].mxu1 }
 0x114   : > { %v615_v13 = vpop.f32.mrb[6].mxu0  ;;  %v679_v14 = vpop.f32.mrb[6].mxu1 }
 0x115   : > { %1274 = vst [vmem:[%s1774_s26] sm:$0xff] %v1273_v7   ;;  %1357 = vst [vmem:[%s1774_s26 + $0x40] sm:$0xff] %v1313_v8   ;;  %v779_v15 = vadd.f32 %v1759_v49, %v740_v9  ;;  %v795_v16 = vadd.f32 %v1759_v49, %v756_v10  ;;  %v741_v17 = vmul.f32 %v1754_v47, %v615_v13  ;;  %v617_v19 = vpop.f32.mrb[7].mxu0  ;;  %v681_v20 = vpop.f32.mrb[7].mxu1 }
 0x116   : > { %v757_v18 = vmul.f32 %v1754_v47, %v679_v14 }
 0x117   : > { %v780_v21 = vadd.f32 %v1759_v49, %v741_v17  ;;  %v811_v23 = vmax.f32 %v779_v15, 0.0  ;;  %v827_v24 = vmax.f32 %v795_v16, 0.0 }
 0x118   : > { %v796_v22 = vadd.f32 %v1759_v49, %v757_v18 }
 0x119   : > { %v812_v25 = vmax.f32 %v780_v21, 0.0 }
 0x11a   : > { %v828_v26 = vmax.f32 %v796_v22, 0.0  ;;  %v620_v27 = vpop.f32.mrb[8].mxu0  ;;  %v684_v28 = vpop.f32.mrb[8].mxu1 }
 0x11b   : > { %v1278_v29 = vpack.c.bf16 %v812_v25, %v811_v23  ;;  %v742_v31 = vmul.f32 %v1754_v47, %v620_v27  ;;  %v758_v32 = vmul.f32 %v1754_v47, %v684_v28  ;;  %v622_v33 = vpop.f32.mrb[9].mxu0  ;;  %v686_v34 = vpop.f32.mrb[9].mxu1 }
 0x11c   : > { %v1318_v30 = vpack.c.bf16 %v828_v26, %v827_v24  ;;  %v623_v35 = vpop.f32.mrb[10].mxu0  ;;  %v687_v36 = vpop.f32.mrb[10].mxu1 }
 0x11d   : > { %1350 = vst [vmem:[%s1774_s26 + $0x8] sm:$0xff] %v1278_v29   ;;  %v781_v37 = vadd.f32 %v1759_v49, %v742_v31  ;;  %v797_v38 = vadd.f32 %v1759_v49, %v758_v32  ;;  %v743_v39 = vmul.f32 %v1754_v47, %v623_v35  ;;  %v759_v40 = vmul.f32 %v1754_v47, %v687_v36  ;;  %v625_v41 = vpop.f32.mrb[11].mxu0  ;;  %v689_v42 = vpop.f32.mrb[11].mxu1 }
 0x11e   : > { %1358 = vst [vmem:[%s1774_s26 + $0x48] sm:$0xff] %v1318_v30  }
 0x11f   : > { %v782_v43 = vadd.f32 %v1759_v49, %v743_v39  ;;  %v798_v44 = vadd.f32 %v1759_v49, %v759_v40  ;;  %v813_v45 = vmax.f32 %v781_v37, 0.0  ;;  %v829_v46 = vmax.f32 %v797_v38, 0.0 }
 0x121   : > { %v814_v48 = vmax.f32 %v782_v43, 0.0  ;;  %v830_v50 = vmax.f32 %v798_v44, 0.0 }
 0x122   : > { %v628_v51 = vpop.f32.mrb[12].mxu0  ;;  %v692_v52 = vpop.f32.mrb[12].mxu1 }
 0x123   : > { %v1283_v53 = vpack.c.bf16 %v814_v48, %v813_v45  ;;  %v1323_v54 = vpack.c.bf16 %v830_v50, %v829_v46  ;;  %v744_v55 = vmul.f32 %v1754_v47, %v628_v51  ;;  %v760_v56 = vmul.f32 %v1754_v47, %v692_v52  ;;  %v630_v57 = vpop.f32.mrb[13].mxu0  ;;  %v694_v58 = vpop.f32.mrb[13].mxu1 }
 0x124   : > { %v631_v59 = vpop.f32.mrb[14].mxu0  ;;  %v695_v60 = vpop.f32.mrb[14].mxu1 }
 0x125   : > { %1351 = vst [vmem:[%s1774_s26 + $0x10] sm:$0xff] %v1283_v53   ;;  %1359 = vst [vmem:[%s1774_s26 + $0x50] sm:$0xff] %v1323_v54   ;;  %v783_v61 = vadd.f32 %v1759_v49, %v744_v55  ;;  %v799_v62 = vadd.f32 %v1759_v49, %v760_v56  ;;  %v745_v63 = vmul.f32 %v1754_v47, %v631_v59  ;;  %v633_v1 = vpop.f32.mrb[15].mxu0  ;;  %v697_v2 = vpop.f32.mrb[15].mxu1 }
 0x126   : > { %v761_v0 = vmul.f32 %v1754_v47, %v695_v60 }
 0x127   : > { %v784_v3 = vadd.f32 %v1759_v49, %v745_v63  ;;  %v815_v5 = vmax.f32 %v783_v61, 0.0  ;;  %v831_v6 = vmax.f32 %v799_v62, 0.0 }
 0x128   : > { %v800_v4 = vadd.f32 %v1759_v49, %v761_v0 }
 0x129   : > { %v816_v7 = vmax.f32 %v784_v3, 0.0 }
 0x12a   : > { %v832_v8 = vmax.f32 %v800_v4, 0.0  ;;  %v636_v9 = vpop.f32.mrb[16].mxu0  ;;  %v700_v10 = vpop.f32.mrb[16].mxu1 }
 0x12b   : > { %v1288_v11 = vpack.c.bf16 %v816_v7, %v815_v5  ;;  %v746_v13 = vmul.f32 %v1754_v47, %v636_v9  ;;  %v762_v14 = vmul.f32 %v1754_v47, %v700_v10  ;;  %v638_v15 = vpop.f32.mrb[17].mxu0  ;;  %v702_v16 = vpop.f32.mrb[17].mxu1 }
 0x12c   : > { %v1328_v12 = vpack.c.bf16 %v832_v8, %v831_v6  ;;  %v639_v17 = vpop.f32.mrb[18].mxu0  ;;  %v703_v18 = vpop.f32.mrb[18].mxu1 }
 0x12d   : > { %1352 = vst [vmem:[%s1774_s26 + $0x18] sm:$0xff] %v1288_v11   ;;  %v785_v19 = vadd.f32 %v1759_v49, %v746_v13  ;;  %v801_v20 = vadd.f32 %v1759_v49, %v762_v14  ;;  %v747_v21 = vmul.f32 %v1754_v47, %v639_v17  ;;  %v763_v22 = vmul.f32 %v1754_v47, %v703_v18  ;;  %v641_v23 = vpop.f32.mrb[19].mxu0  ;;  %v705_v24 = vpop.f32.mrb[19].mxu1 }
 0x12e   : > { %1360 = vst [vmem:[%s1774_s26 + $0x58] sm:$0xff] %v1328_v12  }
 0x12f   : > { %v786_v25 = vadd.f32 %v1759_v49, %v747_v21  ;;  %v802_v26 = vadd.f32 %v1759_v49, %v763_v22  ;;  %v817_v27 = vmax.f32 %v785_v19, 0.0  ;;  %v833_v28 = vmax.f32 %v801_v20, 0.0 }
 0x131   : > { %v818_v29 = vmax.f32 %v786_v25, 0.0  ;;  %v834_v30 = vmax.f32 %v802_v26, 0.0 }
 0x132   : > { %v644_v31 = vpop.f32.mrb[20].mxu0  ;;  %v708_v32 = vpop.f32.mrb[20].mxu1 }
 0x133   : > { %v1293_v33 = vpack.c.bf16 %v818_v29, %v817_v27  ;;  %v1333_v34 = vpack.c.bf16 %v834_v30, %v833_v28  ;;  %v748_v35 = vmul.f32 %v1754_v47, %v644_v31  ;;  %v764_v36 = vmul.f32 %v1754_v47, %v708_v32  ;;  %v646_v37 = vpop.f32.mrb[21].mxu0  ;;  %v710_v38 = vpop.f32.mrb[21].mxu1 }
 0x134   : > { %v647_v39 = vpop.f32.mrb[22].mxu0  ;;  %v711_v40 = vpop.f32.mrb[22].mxu1 }
 0x135   : > { %1353 = vst [vmem:[%s1774_s26 + $0x20] sm:$0xff] %v1293_v33   ;;  %1361 = vst [vmem:[%s1774_s26 + $0x60] sm:$0xff] %v1333_v34   ;;  %v787_v41 = vadd.f32 %v1759_v49, %v748_v35  ;;  %v803_v42 = vadd.f32 %v1759_v49, %v764_v36  ;;  %v749_v43 = vmul.f32 %v1754_v47, %v647_v39  ;;  %v649_v45 = vpop.f32.mrb[23].mxu0  ;;  %v713_v46 = vpop.f32.mrb[23].mxu1 }
 0x136   : > { %v765_v44 = vmul.f32 %v1754_v47, %v711_v40 }
 0x137   : > { %v788_v48 = vadd.f32 %v1759_v49, %v749_v43  ;;  %v819_v51 = vmax.f32 %v787_v41, 0.0  ;;  %v835_v52 = vmax.f32 %v803_v42, 0.0 }
 0x138   : > { %v804_v50 = vadd.f32 %v1759_v49, %v765_v44 }
 0x139   : > { %v820_v53 = vmax.f32 %v788_v48, 0.0 }
 0x13a   : > { %v836_v54 = vmax.f32 %v804_v50, 0.0  ;;  %v652_v55 = vpop.f32.mrb[24].mxu0  ;;  %v716_v56 = vpop.f32.mrb[24].mxu1 }
 0x13b   : > { %v1298_v57 = vpack.c.bf16 %v820_v53, %v819_v51  ;;  %v750_v59 = vmul.f32 %v1754_v47, %v652_v55  ;;  %v766_v60 = vmul.f32 %v1754_v47, %v716_v56  ;;  %v654_v61 = vpop.f32.mrb[25].mxu0  ;;  %v718_v62 = vpop.f32.mrb[25].mxu1 }
 0x13c   : > { %v1338_v58 = vpack.c.bf16 %v836_v54, %v835_v52  ;;  %v655_v63 = vpop.f32.mrb[26].mxu0  ;;  %v719_v0 = vpop.f32.mrb[26].mxu1 }
 0x13d   : > { %1354 = vst [vmem:[%s1774_s26 + $0x28] sm:$0xff] %v1298_v57   ;;  %v789_v1 = vadd.f32 %v1759_v49, %v750_v59  ;;  %v805_v2 = vadd.f32 %v1759_v49, %v766_v60  ;;  %v751_v3 = vmul.f32 %v1754_v47, %v655_v63  ;;  %v767_v4 = vmul.f32 %v1754_v47, %v719_v0  ;;  %v657_v5 = vpop.f32.mrb[27].mxu0  ;;  %v721_v6 = vpop.f32.mrb[27].mxu1 }
 0x13e   : > { %1362 = vst [vmem:[%s1774_s26 + $0x68] sm:$0xff] %v1338_v58  }
 0x13f   : > { %v790_v7 = vadd.f32 %v1759_v49, %v751_v3  ;;  %v806_v8 = vadd.f32 %v1759_v49, %v767_v4  ;;  %v821_v9 = vmax.f32 %v789_v1, 0.0  ;;  %v837_v10 = vmax.f32 %v805_v2, 0.0 }
 0x141   : > { %v822_v11 = vmax.f32 %v790_v7, 0.0  ;;  %v838_v12 = vmax.f32 %v806_v8, 0.0 }
 0x142   : > { %v660_v13 = vpop.f32.mrb[28].mxu0  ;;  %v724_v14 = vpop.f32.mrb[28].mxu1 }
 0x143   : > { %v1303_v15 = vpack.c.bf16 %v822_v11, %v821_v9  ;;  %v1343_v16 = vpack.c.bf16 %v838_v12, %v837_v10  ;;  %v752_v17 = vmul.f32 %v1754_v47, %v660_v13  ;;  %v768_v18 = vmul.f32 %v1754_v47, %v724_v14  ;;  %v662_v19 = vpop.f32.mrb[29].mxu0  ;;  %v726_v20 = vpop.f32.mrb[29].mxu1 }
 0x144   : > { %v663_v21 = vpop.f32.mrb[30].mxu0  ;;  %v727_v22 = vpop.f32.mrb[30].mxu1 }
 0x145   : > { %1355 = vst [vmem:[%s1774_s26 + $0x30] sm:$0xff] %v1303_v15   ;;  %1363 = vst [vmem:[%s1774_s26 + $0x70] sm:$0xff] %v1343_v16   ;;  %v791_v23 = vadd.f32 %v1759_v49, %v752_v17  ;;  %v807_v24 = vadd.f32 %v1759_v49, %v768_v18  ;;  %v753_v25 = vmul.f32 %v1754_v47, %v663_v21  ;;  %v665_v27 = vpop.f32.mrb[31].mxu0  ;;  %v729_v28 = vpop.f32.mrb[31].mxu1 }
 0x146   : > { %v769_v26 = vmul.f32 %v1754_v47, %v727_v22 }
 0x147   : > { %v792_v29 = vadd.f32 %v1759_v49, %v753_v25  ;;  %v823_v31 = vmax.f32 %v791_v23, 0.0  ;;  %v839_v32 = vmax.f32 %v807_v24, 0.0 }
 0x148   : > { %v808_v30 = vadd.f32 %v1759_v49, %v769_v26 }
 0x149   : > { %v824_v33 = vmax.f32 %v792_v29, 0.0 }
 0x14a   : > { %v840_v34 = vmax.f32 %v808_v30, 0.0 }
 0x14b   : > { %v1308_v47 = vpack.c.bf16 %v824_v33, %v823_v31 }
 0x14c   : > { %v1348_v35 = vpack.c.bf16 %v840_v34, %v839_v32 }
 0x14d   : > { %1356 = vst [vmem:[%s1774_s26 + $0x38] sm:$0xff] %v1308_v47  }
 0x14e   : > { %1364 = vst [vmem:[%s1774_s26 + $0x78] sm:$0xff] %v1348_v35  }
 0x14f   : > { %1515 = shalt.err (!%p1512_p5)
}
 0x150   : > { %s1516_s12 = scalar_lea.hbm %s1849_s7, 2048  ;;  %s1520_s22 = scalar_lea.hbm %s1907_s4, 4096 }
 0x151   : > { %p1517_p6 = scmp.ne.s32.totalorder %s1849_s7, %s1516_s12  ;;  %p1521_p10 = scmp.lt.u32.totalorder %s1849_s7, %s1907_s4 }
 0x152   : > { %p1522_p11 = scmp.lt.u32.totalorder %s1520_s22, %s1516_s12  ;;  %p1524_p13 = scmp.lt.u32.totalorder %s1516_s12, %s1849_s7 }
 0x153   : > { %p1518_p7 = pnand %p1517_p6, %p1652_p4 }
 0x154   : > { %p1523_p12 = por %p1522_p11, %p1521_p10 }
 0x155   : > { %p1519_p9 = pneg %p1518_p7 }
 0x156   : > { %p1525_p0 = por %p1524_p13, %p1523_p12 }
 0x158   : > { %p1526_p1 = pnand %p1525_p0, %p1519_p9 }
 0x15a   : > { %1529 = shalt.err (!%p1526_p1)
}
 0x15b   : > { %s1585_s26 = smov 64   ;;  %s1586_s29 = smov 4  }
 0x15c   : > { %1385 = dma.vmem_to_hbm [thread:$0]  (%p1652_p4), %s1851_s30, 2048, %s1849_s7, %s1857_s18, %s1585_s26, %s1585_s26, %s1586_s29  }
 0x15d PF: > { %p1391_p2 = scmp.ge.s32.totalorder %s1580_s20, 2  ;;  %s1031_s5 = sand.u32 1, %s1560_s15  }
 0x15e   : > { %s1032_s6 = scalar_lea.sflag [#allocation3], %s1031_s5 }
 0x15f   : > { %p1388_p3 = pnand %p1391_p2, %p1659_p8 }
 0x161   : > { %1555 = dma.done.wait (!%p1388_p3), %s1032_s6, 2048  }
 0x162   : > { %1557 = vsyncadd (!%p1388_p3), %s1032_s6, 4294965248  ;;  %s17_s20 = sadd.s32 1, %s1580_s20   ;;  %s1910_s15 = smov %s1564_s16 }
 0x163   : > { %p14_p5 = scmp.ge.s32.totalorder %s17_s20, 4   ;;  %s1911_s16 = smov %s1568_s17 }
 0x164   : > { %s1912_s17 = smov %s1665_s28  ;;  %s1913_s18 = smov %s1576_s19 }
 0x165   : > { %s1914_s19 = smov %s1916_s23  ;;  %16 = sbr.rel (!%p14_p5) target bundleno = 4 (0x4), region = 80 }
 0x16c   :  { %1037 = vsyncpa [#allocation3], 1 }
 0x16d   :  { %1039 = vsyncpa [#allocation3 + $0x1], 1 }

</bundles_post_ra>
